<compile_context>
chip_gen: v5e
topology: v5e:2x2
jax: 0.10.0
libtpu: 0.0.40
codegen_flags: <defaults>
</compile_context>

<pallas_src>
import jax
import jax.numpy as jnp
from jax.experimental import pallas as pl
from jax.experimental.pallas import tpu as pltpu


def _double_conv_kernel(x_ref, dn_ref, up_ref, wb1_ref, s1_ref, b1_ref,
                        wb2_ref, s2_ref, b2_ref, o_ref):
    # x_ref : (1, M, W*Cin)   f32  lane-flattened NHWC rows, M = nb*H
    # dn/up : (M, 1)          f32  0/1 masks killing rows that cross image tops/bottoms
    # wb*   : (3*W*Ci, W*Co)  bf16 banded conv weights, ky taps stacked along K
    # s*/b* : (1, W*C)        f32  folded (conv bias + eval BN) scale/bias tiled over W
    # o_ref : (1, M, W*Cout)  f32
    f32 = jnp.float32
    M = o_ref.shape[1]

    dn_m = dn_ref[...]                                   # (M, 1)
    up_m = up_ref[...]                                   # (M, 1)

    def conv_bn_relu(a, wb_ref, s_ref, b_ref):
        # Height shifts on the XLU (roll) + VPU mask; all three ky taps fused
        # into one K = 3*W*Ci bf16 MXU matmul with f32 accumulation.
        a_dn = pltpu.roll(a, shift=1, axis=0) * dn_m     # a_dn[y] = a[y-1]
        a_up = pltpu.roll(a, shift=M - 1, axis=0) * up_m # a_up[y] = a[y+1]
        cat = jnp.concatenate([a_dn, a, a_up], axis=1).astype(jnp.bfloat16)
        acc = jnp.dot(cat, wb_ref[...], preferred_element_type=f32)
        return jnp.maximum(acc * s_ref[...] + b_ref[...], 0.0)

    x0 = x_ref[0]                                        # (M, W*Cin) f32
    h1 = conv_bn_relu(x0, wb1_ref, s1_ref, b1_ref)       # (M, W*Cmid) f32
    out = conv_bn_relu(h1, wb2_ref, s2_ref, b2_ref)      # (M, W*Cout) f32
    o_ref[0] = out.astype(o_ref.dtype)


def _band_weight(w, width):
    """w: (3, 3, Ci, Co) HWIO -> (3, width*Ci, width*Co) banded per-ky matrices.

    wb[ky, u*Ci+i, x*Co+o] = w[ky, kx, i, o] where u = x + kx - 1 (zero when u
    falls outside [0, width), implementing the width zero-padding).
    """
    kh, kw, ci, co = w.shape
    u = jnp.arange(width)
    x = jnp.arange(width)
    k = jnp.arange(kw)
    band = (u[None, :, None] == (x[None, None, :] + k[:, None, None] - 1))
    band = band.astype(w.dtype)                              # (kw, W, W)
    wb = jnp.einsum("kux,ykio->yuixo", band, w)              # (kh, W, Ci, W, Co)
    return wb.reshape(kh, width * ci, width * co)


def prepare_double_conv(w1, s1, b1, w2, s2, b2, width):
    """One-time weight banding + ky fusion + bf16 cast + scale/bias tiling."""
    cmid = w1.shape[3]
    cout = w2.shape[3]
    wb1 = _band_weight(w1, width).reshape(3 * width * w1.shape[2], width * cmid)
    wb2 = _band_weight(w2, width).reshape(3 * width * cmid, width * cout)
    wb1 = wb1.astype(jnp.bfloat16)
    wb2 = wb2.astype(jnp.bfloat16)
    s1_t = jnp.tile(s1.reshape(-1), width).reshape(1, width * cmid).astype(jnp.float32)
    b1_t = jnp.tile(b1.reshape(-1), width).reshape(1, width * cmid).astype(jnp.float32)
    s2_t = jnp.tile(s2.reshape(-1), width).reshape(1, width * cout).astype(jnp.float32)
    b2_t = jnp.tile(b2.reshape(-1), width).reshape(1, width * cout).astype(jnp.float32)
    return wb1, s1_t, b1_t, wb2, s2_t, b2_t


def double_conv_pallas(x_nchw, prep):
    """x_nchw: (N, Cin, H, W) f32; prep = prepare_double_conv(...).
    Returns (N, Cout, H, W) f32 (PyTorch eval-mode DoubleConv semantics)."""
    wb1, s1_t, b1_t, wb2, s2_t, b2_t = prep
    N, Cin, H, W = x_nchw.shape
    Cmid = s1_t.shape[1] // W
    Cout = s2_t.shape[1] // W

    # Pack images per grid step so the matmul M dim (nb*H) approaches the MXU
    # depth (<= 256 rows) and the grid-step overhead is amortized.
    nb = 1
    for d in range(1, N + 1):
        if N % d == 0 and d * H <= 256:
            nb = d
    G = N // nb
    M = nb * H

    # NCHW -> NHWC -> lane-flattened row groups (G, M, W*Cin); no host-side pad.
    x_rows = jnp.transpose(x_nchw, (0, 2, 3, 1)).reshape(G, M, W * Cin)

    # 0/1 masks zeroing shifted rows that cross image boundaries in the group.
    r = jnp.arange(M)
    dn_mask = (r % H != 0).astype(jnp.float32).reshape(M, 1)
    up_mask = (r % H != H - 1).astype(jnp.float32).reshape(M, 1)

    # Actual issued MXU work (banded, ky-fused matmuls), not nominal conv FLOPs.
    flops = G * 2 * M * 3 * W * W * (Cin * Cmid + Cmid * Cout)
    bytes_accessed = (4 * (x_rows.size + G * M * W * Cout)
                      + 2 * (wb1.size + wb2.size)
                      + 4 * (s1_t.size + b1_t.size + s2_t.size + b2_t.size
                             + dn_mask.size + up_mask.size))

    out_rows = pl.pallas_call(
        _double_conv_kernel,
        out_shape=jax.ShapeDtypeStruct((G, M, W * Cout), jnp.float32),
        grid_spec=pltpu.PrefetchScalarGridSpec(
            num_scalar_prefetch=0,
            grid=(G,),
            in_specs=[
                pl.BlockSpec((1, M, W * Cin), lambda g: (g, 0, 0)),
                pl.BlockSpec((M, 1), lambda g: (0, 0)),
                pl.BlockSpec((M, 1), lambda g: (0, 0)),
                pl.BlockSpec((3 * W * Cin, W * Cmid), lambda g: (0, 0)),
                pl.BlockSpec((1, W * Cmid), lambda g: (0, 0)),
                pl.BlockSpec((1, W * Cmid), lambda g: (0, 0)),
                pl.BlockSpec((3 * W * Cmid, W * Cout), lambda g: (0, 0)),
                pl.BlockSpec((1, W * Cout), lambda g: (0, 0)),
                pl.BlockSpec((1, W * Cout), lambda g: (0, 0)),
            ],
            out_specs=pl.BlockSpec((1, M, W * Cout), lambda g: (g, 0, 0)),
        ),
        compiler_params=pltpu.CompilerParams(
            dimension_semantics=("parallel",)),
        cost_estimate=pl.CostEstimate(
            flops=flops, transcendentals=0, bytes_accessed=bytes_accessed),
    )(x_rows, dn_mask, up_mask, wb1, s1_t, b1_t, wb2, s2_t, b2_t)

    out = out_rows.reshape(N, H, W, Cout)
    return jnp.transpose(out, (0, 3, 1, 2))                  # NHWC -> NCHW


def make_params(key, cin, cmid, cout):
    """Deterministic synthetic parameters (conv weights/bias + BN stats)."""
    ks = jax.random.split(key, 12)
    w1 = 0.1 * jax.random.normal(ks[0], (3, 3, cin, cmid), jnp.float32)
    cb1 = 0.1 * jax.random.normal(ks[1], (cmid,), jnp.float32)
    g1 = 1.0 + 0.1 * jax.random.normal(ks[2], (cmid,), jnp.float32)
    be1 = 0.1 * jax.random.normal(ks[3], (cmid,), jnp.float32)
    rm1 = 0.1 * jax.random.normal(ks[4], (cmid,), jnp.float32)
    rv1 = jnp.abs(1.0 + 0.1 * jax.random.normal(ks[5], (cmid,), jnp.float32))

    w2 = 0.1 * jax.random.normal(ks[6], (3, 3, cmid, cout), jnp.float32)
    cb2 = 0.1 * jax.random.normal(ks[7], (cout,), jnp.float32)
    g2 = 1.0 + 0.1 * jax.random.normal(ks[8], (cout,), jnp.float32)
    be2 = 0.1 * jax.random.normal(ks[9], (cout,), jnp.float32)
    rm2 = 0.1 * jax.random.normal(ks[10], (cout,), jnp.float32)
    rv2 = jnp.abs(1.0 + 0.1 * jax.random.normal(ks[11], (cout,), jnp.float32))
    return (w1, cb1, g1, be1, rm1, rv1, w2, cb2, g2, be2, rm2, rv2)


def fold_bn(cb, g, be, rm, rv, eps=1e-5):
    """Fold conv-bias + eval-mode BN into per-channel scale/bias (flat vectors)."""
    s = g / jnp.sqrt(rv + eps)
    b = be + s * (cb - rm)
    return s, b


def reference(x_nchw, params, eps=1e-5):
    """Pure-JAX f32 reference (NHWC lax conv), PyTorch eval-mode semantics."""
    (w1, cb1, g1, be1, rm1, rv1, w2, cb2, g2, be2, rm2, rv2) = params
    x = jnp.transpose(x_nchw, (0, 2, 3, 1))

    def block(x, w, cb, g, be, rm, rv):
        y = jax.lax.conv_general_dilated(
            x, w, window_strides=(1, 1), padding="SAME",
            dimension_numbers=("NHWC", "HWIO", "NHWC")) + cb
        y = (y - rm) / jnp.sqrt(rv + eps) * g + be
        return jnp.maximum(y, 0.0)

    y = block(x, w1, cb1, g1, be1, rm1, rv1)
    y = block(y, w2, cb2, g2, be2, rm2, rv2)
    return jnp.transpose(y, (0, 3, 1, 2))


if __name__ == "__main__":
    key = jax.random.PRNGKey(0)
    kx, kp = jax.random.split(key)

    N, CIN, COUT, H, W = 2, 4, 8, 16, 16   # mid_channels defaults to out_channels
    CMID = COUT

    x = jax.random.normal(kx, (N, CIN, H, W), jnp.float32)
    params = make_params(kp, CIN, CMID, COUT)
    (w1, cb1, g1, be1, rm1, rv1, w2, cb2, g2, be2, rm2, rv2) = params
    s1, b1 = fold_bn(cb1, g1, be1, rm1, rv1)
    s2, b2 = fold_bn(cb2, g2, be2, rm2, rv2)

    prep = prepare_double_conv(w1, s1, b1, w2, s2, b2, W)    # once, off hot path
    run = jax.jit(double_conv_pallas)

    out = jax.block_until_ready(run(x, prep))
    ref = jax.block_until_ready(reference(x, params))

    assert out.shape == (N, COUT, H, W), out.shape
    max_err = float(jnp.max(jnp.abs(out - ref)))
    # Tolerance loosened vs. the f32 version: matmul operands are bf16
    # (accumulation stays f32), expected max abs error ~1e-2.
    assert jnp.allclose(out, ref, atol=5e-2, rtol=5e-2), max_err
    print("KERNEL_OK")
</pallas_src>

<mosaic_0001>
module attributes {stable_mosaic.version = 11 : i64} {
  func.func @_double_conv_kernel(%arg0: i32, %arg1: memref<1x32x64xf32, #tpu.memory_space<vmem>>, %arg2: memref<32x1xf32, #tpu.memory_space<vmem>>, %arg3: memref<32x1xf32, #tpu.memory_space<vmem>>, %arg4: memref<192x128xbf16, #tpu.memory_space<vmem>>, %arg5: memref<1x128xf32, #tpu.memory_space<vmem>>, %arg6: memref<1x128xf32, #tpu.memory_space<vmem>>, %arg7: memref<384x128xbf16, #tpu.memory_space<vmem>>, %arg8: memref<1x128xf32, #tpu.memory_space<vmem>>, %arg9: memref<1x128xf32, #tpu.memory_space<vmem>>, %arg10: memref<1x32x128xf32, #tpu.memory_space<vmem>>) attributes {dimension_semantics = [#tpu.dimension_semantics<parallel>], iteration_bounds = array<i64: 1>, scalar_prefetch = 0 : i64, scratch_operands = 0 : i64, tpu.core_type = #tpu.core_type<tc>, window_params = [{transform_indices = @transform_0, window_bounds = array<i64: 1, 32, 64>}, {pipeline_mode = #tpu.pipeline_mode<synchronous>, transform_indices = @transform_1, window_bounds = array<i64: 32, 1>}, {pipeline_mode = #tpu.pipeline_mode<synchronous>, transform_indices = @transform_2, window_bounds = array<i64: 32, 1>}, {pipeline_mode = #tpu.pipeline_mode<synchronous>, transform_indices = @transform_3, window_bounds = array<i64: 192, 128>}, {pipeline_mode = #tpu.pipeline_mode<synchronous>, transform_indices = @transform_4, window_bounds = array<i64: 1, 128>}, {pipeline_mode = #tpu.pipeline_mode<synchronous>, transform_indices = @transform_5, window_bounds = array<i64: 1, 128>}, {pipeline_mode = #tpu.pipeline_mode<synchronous>, transform_indices = @transform_6, window_bounds = array<i64: 384, 128>}, {pipeline_mode = #tpu.pipeline_mode<synchronous>, transform_indices = @transform_7, window_bounds = array<i64: 1, 128>}, {pipeline_mode = #tpu.pipeline_mode<synchronous>, transform_indices = @transform_8, window_bounds = array<i64: 1, 128>}, {transform_indices = @transform_9, window_bounds = array<i64: 1, 32, 128>}]} {
    %c0 = arith.constant 0 : index
    %c0_0 = arith.constant 0 : index
    %0 = vector.load %arg2[%c0, %c0_0] : memref<32x1xf32, #tpu.memory_space<vmem>>, vector<32x1xf32>
    %c0_1 = arith.constant 0 : index
    %c0_2 = arith.constant 0 : index
    %1 = vector.load %arg3[%c0_1, %c0_2] : memref<32x1xf32, #tpu.memory_space<vmem>>, vector<32x1xf32>
    %c0_3 = arith.constant 0 : index
    %c0_4 = arith.constant 0 : index
    %c0_5 = arith.constant 0 : index
    %2 = vector.load %arg1[%c0_3, %c0_4, %c0_5] : memref<1x32x64xf32, #tpu.memory_space<vmem>>, vector<1x32x64xf32>
    %3 = vector.shape_cast %2 : vector<1x32x64xf32> to vector<32x64xf32>
    %c1_i32 = arith.constant 1 : i32
    %4 = tpu.dynamic_rotate %3 by %c1_i32 dim 0 : vector<32x64xf32>, i32 -> vector<32x64xf32>
    %5 = vector.broadcast %0 : vector<32x1xf32> to vector<32x64xf32>
    %6 = arith.mulf %4, %5 : vector<32x64xf32>
    %c31_i32 = arith.constant 31 : i32
    %7 = tpu.dynamic_rotate %3 by %c31_i32 dim 0 : vector<32x64xf32>, i32 -> vector<32x64xf32>
    %8 = vector.broadcast %1 : vector<32x1xf32> to vector<32x64xf32>
    %9 = arith.mulf %7, %8 : vector<32x64xf32>
    %10 = tpu.concatenate %6, %3, %9 in 1 : vector<32x64xf32>, vector<32x64xf32>, vector<32x64xf32> -> vector<32x192xf32>
    %11 = arith.truncf %10 : vector<32x192xf32> to vector<32x192xbf16>
    %c0_6 = arith.constant 0 : index
    %c0_7 = arith.constant 0 : index
    %12 = vector.load %arg4[%c0_6, %c0_7] : memref<192x128xbf16, #tpu.memory_space<vmem>>, vector<192x128xbf16>
    %cst = arith.constant dense<0.000000e+00> : vector<32x128xf32>
    %13 = tpu.matmul %11, %12, %cst {dimension_numbers = #tpu.dot_dimension_numbers<[1], [0], [0], [1], [0, 0, 1, 1], [], []>} : vector<32x192xbf16>, vector<192x128xbf16>, vector<32x128xf32> -> vector<32x128xf32>
    %c0_8 = arith.constant 0 : index
    %c0_9 = arith.constant 0 : index
    %14 = vector.load %arg5[%c0_8, %c0_9] : memref<1x128xf32, #tpu.memory_space<vmem>>, vector<1x128xf32>
    %15 = vector.broadcast %14 : vector<1x128xf32> to vector<32x128xf32>
    %16 = arith.mulf %13, %15 : vector<32x128xf32>
    %c0_10 = arith.constant 0 : index
    %c0_11 = arith.constant 0 : index
    %17 = vector.load %arg6[%c0_10, %c0_11] : memref<1x128xf32, #tpu.memory_space<vmem>>, vector<1x128xf32>
    %18 = vector.broadcast %17 : vector<1x128xf32> to vector<32x128xf32>
    %19 = arith.addf %16, %18 : vector<32x128xf32>
    %cst_12 = arith.constant 0.000000e+00 : f32
    %20 = vector.broadcast %cst_12 : f32 to vector<32x128xf32>
    %21 = arith.maximumf %19, %20 : vector<32x128xf32>
    %c1_i32_13 = arith.constant 1 : i32
    %22 = tpu.dynamic_rotate %21 by %c1_i32_13 dim 0 : vector<32x128xf32>, i32 -> vector<32x128xf32>
    %23 = vector.broadcast %0 : vector<32x1xf32> to vector<32x128xf32>
    %24 = arith.mulf %22, %23 : vector<32x128xf32>
    %c31_i32_14 = arith.constant 31 : i32
    %25 = tpu.dynamic_rotate %21 by %c31_i32_14 dim 0 : vector<32x128xf32>, i32 -> vector<32x128xf32>
    %26 = vector.broadcast %1 : vector<32x1xf32> to vector<32x128xf32>
    %27 = arith.mulf %25, %26 : vector<32x128xf32>
    %28 = tpu.concatenate %24, %21, %27 in 1 : vector<32x128xf32>, vector<32x128xf32>, vector<32x128xf32> -> vector<32x384xf32>
    %29 = arith.truncf %28 : vector<32x384xf32> to vector<32x384xbf16>
    %c0_15 = arith.constant 0 : index
    %c0_16 = arith.constant 0 : index
    %30 = vector.load %arg7[%c0_15, %c0_16] : memref<384x128xbf16, #tpu.memory_space<vmem>>, vector<384x128xbf16>
    %cst_17 = arith.constant dense<0.000000e+00> : vector<32x128xf32>
    %31 = tpu.matmul %29, %30, %cst_17 {dimension_numbers = #tpu.dot_dimension_numbers<[1], [0], [0], [1], [0, 0, 1, 1], [], []>} : vector<32x384xbf16>, vector<384x128xbf16>, vector<32x128xf32> -> vector<32x128xf32>
    %c0_18 = arith.constant 0 : index
    %c0_19 = arith.constant 0 : index
    %32 = vector.load %arg8[%c0_18, %c0_19] : memref<1x128xf32, #tpu.memory_space<vmem>>, vector<1x128xf32>
    %33 = vector.broadcast %32 : vector<1x128xf32> to vector<32x128xf32>
    %34 = arith.mulf %31, %33 : vector<32x128xf32>
    %c0_20 = arith.constant 0 : index
    %c0_21 = arith.constant 0 : index
    %35 = vector.load %arg9[%c0_20, %c0_21] : memref<1x128xf32, #tpu.memory_space<vmem>>, vector<1x128xf32>
    %36 = vector.broadcast %35 : vector<1x128xf32> to vector<32x128xf32>
    %37 = arith.addf %34, %36 : vector<32x128xf32>
    %cst_22 = arith.constant 0.000000e+00 : f32
    %38 = vector.broadcast %cst_22 : f32 to vector<32x128xf32>
    %39 = arith.maximumf %37, %38 : vector<32x128xf32>
    %c0_23 = arith.constant 0 : index
    %c0_24 = arith.constant 0 : index
    %c0_25 = arith.constant 0 : index
    %40 = vector.load %arg10[%c0_23, %c0_24, %c0_25] : memref<1x32x128xf32, #tpu.memory_space<vmem>>, vector<1x32x128xf32>
    %41 = vector.shape_cast %40 : vector<1x32x128xf32> to vector<32x128xf32>
    %42 = vector.shape_cast %39 : vector<32x128xf32> to vector<1x32x128xf32>
    tpu.vector_store %arg10[%c0_23, %c0_24, %c0_25], %42 {strides = array<i32>} : memref<1x32x128xf32, #tpu.memory_space<vmem>>, vector<1x32x128xf32>,
    return
  }
  func.func @transform_0(%arg0: i32) -> (i32, i32, i32) {
    %c0_i32 = arith.constant 0 : i32
    %c0_i32_0 = arith.constant 0 : i32
    %c0_i32_1 = arith.constant 0 : i32
    return %arg0, %c0_i32, %c0_i32_0 : i32, i32, i32
  }
  func.func @transform_1(%arg0: i32) -> (i32, i32) {
    %c0_i32 = arith.constant 0 : i32
    %c0_i32_0 = arith.constant 0 : i32
    %c0_i32_1 = arith.constant 0 : i32
    return %c0_i32, %c0_i32_0 : i32, i32
  }
  func.func @transform_2(%arg0: i32) -> (i32, i32) {
    %c0_i32 = arith.constant 0 : i32
    %c0_i32_0 = arith.constant 0 : i32
    %c0_i32_1 = arith.constant 0 : i32
    return %c0_i32, %c0_i32_0 : i32, i32
  }
  func.func @transform_3(%arg0: i32) -> (i32, i32) {
    %c0_i32 = arith.constant 0 : i32
    %c0_i32_0 = arith.constant 0 : i32
    %c0_i32_1 = arith.constant 0 : i32
    return %c0_i32, %c0_i32_0 : i32, i32
  }
  func.func @transform_4(%arg0: i32) -> (i32, i32) {
    %c0_i32 = arith.constant 0 : i32
    %c0_i32_0 = arith.constant 0 : i32
    %c0_i32_1 = arith.constant 0 : i32
    return %c0_i32, %c0_i32_0 : i32, i32
  }
  func.func @transform_5(%arg0: i32) -> (i32, i32) {
    %c0_i32 = arith.constant 0 : i32
    %c0_i32_0 = arith.constant 0 : i32
    %c0_i32_1 = arith.constant 0 : i32
    return %c0_i32, %c0_i32_0 : i32, i32
  }
  func.func @transform_6(%arg0: i32) -> (i32, i32) {
    %c0_i32 = arith.constant 0 : i32
    %c0_i32_0 = arith.constant 0 : i32
    %c0_i32_1 = arith.constant 0 : i32
    return %c0_i32, %c0_i32_0 : i32, i32
  }
  func.func @transform_7(%arg0: i32) -> (i32, i32) {
    %c0_i32 = arith.constant 0 : i32
    %c0_i32_0 = arith.constant 0 : i32
    %c0_i32_1 = arith.constant 0 : i32
    return %c0_i32, %c0_i32_0 : i32, i32
  }
  func.func @transform_8(%arg0: i32) -> (i32, i32) {
    %c0_i32 = arith.constant 0 : i32
    %c0_i32_0 = arith.constant 0 : i32
    %c0_i32_1 = arith.constant 0 : i32
    return %c0_i32, %c0_i32_0 : i32, i32
  }
  func.func @transform_9(%arg0: i32) -> (i32, i32, i32) {
    %c0_i32 = arith.constant 0 : i32
    %c0_i32_0 = arith.constant 0 : i32
    %c0_i32_1 = arith.constant 0 : i32
    return %arg0, %c0_i32, %c0_i32_0 : i32, i32, i32
  }
}

</mosaic_0001>

<bundles_post_ra>
// kernel: double_conv_pallas.1
= control target key start
LH: loop header
LB: loop body
LE: loop exit
PB: predicated region body
PF: predicated region fallthrough
CT: control target
= control target key end

     0   :  { %v806_v0 = vmov 0   ;;  %s807_s25 = smov 64   ;;  %v49_v21 = vlaneseq  ;;  %vm129_vm2 = vcmask 523264   ;;  %s1120_s2 = inlined_call_operand.vmem [shape: f32[32,1], index: 2, kind: input, shape index: {}]   ;;  %s1121_s1 = inlined_call_operand.vmem [shape: f32[32,1], index: 1, kind: input, shape index: {}]   ;;  %s1122_s0 = inlined_call_operand.vmem [shape: f32[1,32,64], index: 0, kind: input, shape index: {}]   ;;  %s1123_s3 = inlined_call_operand.vmem [shape: bf16[192,128], index: 3, kind: input, shape index: {}]   ;;  %s1124_s6 = inlined_call_operand.vmem [shape: bf16[384,128], index: 6, kind: input, shape index: {}]   ;;  %s1125_s4 = inlined_call_operand.vmem [shape: f32[1,128], index: 4, kind: input, shape index: {}]   ;;  %s1126_s5 = inlined_call_operand.vmem [shape: f32[1,128], index: 5, kind: input, shape index: {}]   ;;  %s1127_s7 = inlined_call_operand.vmem [shape: f32[1,128], index: 7, kind: input, shape index: {}]   ;;  %s1128_s8 = inlined_call_operand.vmem [shape: f32[1,128], index: 8, kind: input, shape index: {}]   ;;  %s1129_s9 = inlined_call_operand.vmem [shape: f32[1,32,128], index: 9, kind: output, shape index: {}]  }
   0x1   :  { %790 = vset.pattern.permute.xlu1 %v806_v0  ;;  %789 = vset.pattern.permute.xlu0 %v806_v0  ;;  %v37_v1 = vld [vmem:[%s1120_s2] sm:$0xff]  ;;  %v872_v4 = vld [vmem:[%s1122_s0 + $0x8] sm:$0xff]  ;;  %v758_v6 = vld [vmem:[%s1123_s3 + $0x38] sm:$0xff] }
   0x2   :  { %v33_v2 = vld [vmem:[%s1121_s1] sm:$0xff]  ;;  %91 = vperm.xlu1 %790, %v37_v1   ;;  %796 = vset.pattern.permute.xlu2 %v806_v0  ;;  %v762_v7 = vld [vmem:[%s1123_s3 + $0x58] sm:$0xff]  ;;  %v38_v8 = vld [vmem:[%s1120_s2 + $0x8] sm:$0xff]  ;;  %v924_v22 = vshrl.u32 %v49_v21, 7  ;;  %v81_v23 = vrot.slane %v872_v4, 1  ;;  %v46_v30 = vrot.slane %v872_v4, 7 }
   0x3   :  { %58 = vperm.xlu0 %789, %v33_v2   ;;  %v867_v3 = vld [vmem:[%s1122_s0] sm:$0xff]  ;;  %v34_v9 = vld [vmem:[%s1121_s1 + $0x8] sm:$0xff]  ;;  %240 = vmatpush.bf16.msra.mxu0 %v758_v6  ;;  %v757_v10 = vld [vmem:[%s1123_s3 + $0x30] sm:$0xff] }
   0x4   :  { %v791_v5 = vpack.i.bf16 %v872_v4, %v867_v3  ;;  %263 = vmatpush.bf16.msra.mxu1 %v762_v7  ;;  %v756_v11 = vld [vmem:[%s1123_s3 + $0x28] sm:$0xff]  ;;  %v35_v12 = vld [vmem:[%s1121_s1 + $0x10] sm:$0xff]  ;;  %v36_v14 = vld [vmem:[%s1121_s1 + $0x18] sm:$0xff]  ;;  %v80_v24 = vrot.slane %v867_v3, 1  ;;  %vm84_vm0 = vcmp.lt.s32.totalorder %v924_v22, 7  ;;  %v45_v31 = vrot.slane %v867_v3, 7 }
   0x5   :  { %v39_v13 = vld [vmem:[%s1120_s2 + $0x10] sm:$0xff]  ;;  %v755_v15 = vld [vmem:[%s1123_s3 + $0x20] sm:$0xff]  ;;  %v914_v17 = vld [vmem:[%s1122_s0 + $0x18] sm:$0xff]  ;;  %vm51_vm1 = vcmp.lt.s32.totalorder %v924_v22, 1 }
   0x6   :  { %792 = vrot.lane.b32.xlu2 %v791_v5, %s807_s25  ;;  %v909_v16 = vld [vmem:[%s1122_s0 + $0x10] sm:$0xff]  ;;  %v754_v18 = vld [vmem:[%s1123_s3 + $0x18] sm:$0xff]  ;;  %v87_v25 = vsel %vm84_vm0, %v80_v24, %v81_v23  ;;  %v760_v28 = vld [vmem:[%s1123_s3 + $0x48] sm:$0xff]  ;;  %v54_v32 = vsel %vm51_vm1, %v45_v31, %v46_v30  ;;  %v48_v39 = vrot.slane %v914_v17, 7  ;;  %v83_v58 = vrot.slane %v914_v17, 1 }
   0x7   :  { %241 = vmatpush.bf16.msra.mxu0 %v757_v10  ;;  %v40_v19 = vld [vmem:[%s1120_s2 + $0x18] sm:$0xff]  ;;  %v797_v20 = vpack.i.bf16 %v914_v17, %v909_v16  ;;  %v761_v26 = vld [vmem:[%s1123_s3 + $0x50] sm:$0xff]  ;;  %v752_v29 = vld [vmem:[%s1123_s3 + $0x8] sm:$0xff]  ;;  %v82_v41 = vrot.slane %v909_v16, 1  ;;  %v47_v60 = vrot.slane %v909_v16, 7 }
   0x8   :  { %v753_v27 = vld [vmem:[%s1123_s3 + $0x10] sm:$0xff]  ;;  %264 = vmatpush.bf16.msra.mxu1 %v761_v26  ;;  %v759_v33 = vld [vmem:[%s1123_s3 + $0x40] sm:$0xff]  ;;  %v778_v35 = vld [vmem:[%s1124_s6 + $0x78] sm:$0xff]  ;;  %v55_v42 = vsel %vm51_vm1, %v48_v39, %v45_v31  ;;  %v88_v0 = vsel %vm84_vm0, %v83_v58, %v80_v24 }
   0x9   :  { %v751_v34 = vld [vmem:[%s1123_s3] sm:$0xff]  ;;  %539 = vmatpush.bf16.msra.mxu3 %v778_v35  ;;  %v777_v40 = vld [vmem:[%s1124_s6 + $0x70] sm:$0xff]  ;;  %v776_v43 = vld [vmem:[%s1124_s6 + $0x68] sm:$0xff]  ;;  %v86_v44 = vsel %vm84_vm0, %v81_v23, %v82_v41  ;;  %v85_v62 = vsel %vm84_vm0, %v82_v41, %v83_v58  ;;  %v53_v1 = vsel %vm51_vm1, %v46_v30, %v47_v60  ;;  %v52_v2 = vsel %vm51_vm1, %v47_v60, %v48_v39 }
   0xa   :  { %96 = vperm.xlu1 %790, %v38_v8   ;;  %v774_v16 = vld [vmem:[%s1124_s6 + $0x58] sm:$0xff]  ;;  %v785_v17 = vld [vmem:[%s1124_s6 + $0xb0] sm:$0xff]  ;;  %v772_v21 = vld [vmem:[%s1124_s6 + $0x48] sm:$0xff] }
   0xb   :  { %63 = vperm.xlu0 %789, %v34_v9   ;;  %242 = vmatpush.bf16.msra.mxu0 %v756_v11  ;;  %v769_v23 = vld [vmem:[%s1124_s6 + $0x30] sm:$0xff]  ;;  %v783_v24 = vld [vmem:[%s1124_s6 + $0xa0] sm:$0xff]  ;;  %v768_v26 = vld [vmem:[%s1124_s6 + $0x28] sm:$0xff] }
   0xc   :  { %265 = vmatpush.bf16.msra.mxu1 %v760_v28  ;;  %v767_v28 = vld [vmem:[%s1124_s6 + $0x20] sm:$0xff]  ;;  %v766_v30 = vld [vmem:[%s1124_s6 + $0x18] sm:$0xff]  ;;  %v780_v31 = vld [vmem:[%s1124_s6 + $0x88] sm:$0xff] }
   0xd   :  { %540 = vmatpush.bf16.msra.mxu3 %v777_v40  ;;  %v764_v35 = vld [vmem:[%s1124_s6 + $0x8] sm:$0xff]  ;;  %v802_v40 = vld [vmem:[%s1125_s4] ss:$0 sm:$0xff] }
   0xe   :  { %68 = vperm.xlu2 %796, %v35_v12   ;;  %v763_v41 = vld [vmem:[%s1124_s6] sm:$0xff] }
   0xf   :  { %243 = vmatpush.bf16.msra.mxu0 %v755_v15  ;;  %v786_v15 = vld [vmem:[%s1124_s6 + $0xb8] sm:$0xff]  ;;  %v805_v22 = vld [vmem:[%s1128_s8] ss:$0 sm:$0xff] }
  0x10   :  { %266 = vmatpush.bf16.msra.mxu1 %v759_v33  ;;  %v779_v33 = vld [vmem:[%s1124_s6 + $0x80] sm:$0xff] }
  0x11   :  { %541 = vmatpush.bf16.msra.mxu3 %v776_v43  ;;  %v803_v43 = vld [vmem:[%s1126_s5] ss:$0 sm:$0xff] }
  0x12   :  { %101 = vperm.xlu1 %790, %v39_v13  }
  0x13   :  { %73 = vperm.xlu0 %789, %v36_v14   ;;  %244 = vmatpush.bf16.msra.mxu0 %v754_v18  ;;  %v775_v14 = vld [vmem:[%s1124_s6 + $0x60] sm:$0xff]  ;;  %v773_v18 = vld [vmem:[%s1124_s6 + $0x50] sm:$0xff] }
  0x14   :  { %558 = vmatpush.bf16.msrb.mxu1 %v786_v15 }
  0x15   :  { %542 = vmatpush.bf16.msra.mxu3 %v775_v14 }
  0x16   :  { %106 = vperm.xlu2 %796, %v40_v19   ;;  %v770_v19 = vld [vmem:[%s1124_s6 + $0x38] sm:$0xff] }
  0x17   :  { %245 = vmatpush.bf16.msra.mxu0 %v753_v27  ;;  %520 = vmatpush.bf16.msra.mxu2 %v770_v19  ;;  %v782_v27 = vld [vmem:[%s1124_s6 + $0x98] sm:$0xff] }
  0x18   :  { %559 = vmatpush.bf16.msrb.mxu1 %v785_v17 }
  0x19   :  { %543 = vmatpush.bf16.msra.mxu3 %v774_v16 }
  0x1b   :  { %798 = vrot.lane.b32.xlu0 %v797_v20, %s807_s25  ;;  %246 = vmatpush.bf16.msra.mxu0 %v752_v29  ;;  %v784_v20 = vld [vmem:[%s1124_s6 + $0xa8] sm:$0xff]  ;;  %v781_v29 = vld [vmem:[%s1124_s6 + $0x90] sm:$0xff] }
  0x1c   :  { %560 = vmatpush.bf16.msrb.mxu1 %v784_v20  ;;  %521 = vmatpush.bf16.msra.mxu2 %v769_v23 }
  0x1d   :  { %544 = vmatpush.bf16.msra.mxu3 %v773_v18 }
  0x1f   :  { %247 = vmatpush.bf16.msra.mxu0 %v751_v34 }
  0x20   :  { %561 = vmatpush.bf16.msrb.mxu1 %v783_v24  ;;  %522 = vmatpush.bf16.msra.mxu2 %v768_v26 }
  0x21   :  { %545 = vmatpush.bf16.msra.mxu3 %v772_v21 }
  0x24   :  { %562 = vmatpush.bf16.msrb.mxu1 %v782_v27  ;;  %523 = vmatpush.bf16.msra.mxu2 %v767_v28 }
  0x28   :  { %563 = vmatpush.bf16.msrb.mxu1 %v781_v29  ;;  %524 = vmatpush.bf16.msra.mxu2 %v766_v30 }
  0x2c   :  { %564 = vmatpush.bf16.msrb.mxu1 %v780_v31 }
  0x30   :  { %565 = vmatpush.bf16.msrb.mxu1 %v779_v33 }
  0x60   :  { %v793_v36 = vpop.permute.xlu2 %792 }
  0x61   :  { %v795_v46 = vunpack.i.h.bf16 %v793_v36  ;;  %v794_v47 = vunpack.i.l.bf16 %v793_v36 }
  0x68   :  { %v981_v53 = vpop.permute.xlu2 %68 }
  0x69   :  { %v78_v6 = vmul.f32 %v981_v53, %v53_v1 }
  0x70   :  { %v994_v63 = vpop.permute.xlu2 %106 }
  0x71   :  { %v112_v4 = vmul.f32 %v994_v63, %v88_v0 }
  0x74   :  { %v957_v37 = vpop.permute.xlu1 %91 }
  0x75   :  { %v959_v38 = vpop.permute.xlu0 %58  ;;  %v109_v50 = vmul.f32 %v957_v37, %v87_v25  ;;  %v771_v25 = vld [vmem:[%s1124_s6 + $0x40] sm:$0xff] }
  0x76   :  { %v76_v45 = vmul.f32 %v959_v38, %v55_v42  ;;  %546 = vmatpush.bf16.msra.mxu3 %v771_v25 }
  0x78   :  { %v130_v55 = vsel %vm129_vm2, %v76_v45, %v794_v47 }
  0x7c   :  { %v974_v48 = vpop.permute.xlu1 %96 }
  0x7d   :  { %v976_v49 = vpop.permute.xlu0 %63  ;;  %v110_v51 = vmul.f32 %v974_v48, %v86_v44 }
  0x7e   :  { %v77_v52 = vmul.f32 %v976_v49, %v54_v32  ;;  %v765_v32 = vld [vmem:[%s1124_s6 + $0x10] sm:$0xff] }
  0x7f   :  { %v135_v54 = vpack.c.bf16 %v110_v51, %v109_v50  ;;  %525 = vmatpush.bf16.msra.mxu2 %v765_v32 }
  0x80   :  { %v131_v56 = vsel %vm129_vm2, %v77_v52, %v795_v46 }
  0x81   :  { %v134_v57 = vpack.c.bf16 %v131_v56, %v130_v55  ;;  %653 = vmatmul.msk.bf16.vlgmr.msra.gmra.mxu1 %vm129_vm2, %v135_v54 }
  0x83   :  { %248 = vmatmul.bf16.vlgmr.msra.gmra.mxu0 %v134_v57  ;;  %526 = vmatpush.bf16.msra.mxu2 %v764_v35 }
  0x84   :  { %v990_v61 = vpop.permute.xlu1 %101 }
  0x85   :  { %v987_v59 = vpop.permute.xlu0 %73  ;;  %v111_v3 = vmul.f32 %v990_v61, %v85_v62 }
  0x86   :  { %v79_v7 = vmul.f32 %v987_v59, %v52_v2 }
  0x87   :  { %v137_v10 = vpack.c.bf16 %v112_v4, %v111_v3  ;;  %527 = vmatpush.bf16.msra.mxu2 %v763_v41 }
  0x8d   :  { %v799_v5 = vpop.permute.xlu0 %798 }
  0x8e   :  { %v801_v8 = vunpack.i.h.bf16 %v799_v5  ;;  %v800_v9 = vunpack.i.l.bf16 %v799_v5 }
  0x90   :  { %v132_v11 = vsel %vm129_vm2, %v78_v6, %v800_v9  ;;  %v133_v12 = vsel %vm129_vm2, %v79_v7, %v801_v8 }
  0x91   :  { %v136_v13 = vpack.c.bf16 %v133_v12, %v132_v11  ;;  %654 = vmatmul.msk.bf16.gmra.mxu1 %vm129_vm2, %v137_v10 }
  0x93   :  { %253 = vmatmul.bf16.gmra.mxu0 %v136_v13 }
  0xfe   :  { %v268_v34 = vpop.f32.mrf.mxu1 }
 0x100   :  { %v249_v36 = vpop.f32.mrf.mxu0 }
 0x101   :  { %v269_v39 = vadd.f32 %v268_v34, %v249_v36 }
 0x103   :  { %v282_v42 = vmul.f32 %v802_v40, %v269_v39 }
 0x105   :  { %v290_v47 = vadd.f32 %v803_v43, %v282_v42 }
 0x106   :  { %v270_v44 = vpop.f32.mrf.mxu1 }
 0x107   :  { %v294_v52 = vmax.f32 %v290_v47, 0.0 }
 0x108   :  { %v251_v45 = vpop.f32.mrf.mxu0 }
 0x109   :  { %v271_v46 = vadd.f32 %v270_v44, %v251_v45  ;;  %v310_v1 = vrot.slane %v294_v52, 1  ;;  %v298_v16 = vrot.slane %v294_v52, 7 }
 0x10b   :  { %v283_v50 = vmul.f32 %v802_v40, %v271_v46 }
 0x10d   :  { %v291_v51 = vadd.f32 %v803_v43, %v283_v50 }
 0x10e   :  { %v273_v55 = vpop.f32.mrf.mxu1 }
 0x10f   :  { %v295_v54 = vmax.f32 %v291_v51, 0.0 }
 0x110   :  { %v254_v56 = vpop.f32.mrf.mxu0 }
 0x111   :  { %v274_v57 = vadd.f32 %v273_v55, %v254_v56  ;;  %v323_v58 = vpack.c.bf16 %v295_v54, %v294_v52  ;;  %v311_v62 = vrot.slane %v295_v54, 1  ;;  %v299_v13 = vrot.slane %v295_v54, 7 }
 0x113   :  { %v284_v60 = vmul.f32 %v802_v40, %v274_v57  ;;  %547 = vmatmul.bf16.vlgmr.msra.gmra.mxu3 %v323_v58  ;;  %v316_v7 = vsel %vm84_vm0, %v310_v1, %v311_v62  ;;  %v304_v19 = vsel %vm51_vm1, %v298_v16, %v299_v13 }
 0x114   :  { %v318_v10 = vmul.f32 %v316_v7, %v957_v37 }
 0x115   :  { %v292_v0 = vadd.f32 %v803_v43, %v284_v60 }
 0x116   :  { %v275_v3 = vpop.f32.mrf.mxu1 }
 0x117   :  { %v296_v2 = vmax.f32 %v292_v0, 0.0 }
 0x118   :  { %v256_v4 = vpop.f32.mrf.mxu0 }
 0x119   :  { %v312_v5 = vrot.slane %v296_v2, 1  ;;  %v276_v6 = vadd.f32 %v275_v3, %v256_v4  ;;  %v300_v28 = vrot.slane %v296_v2, 7 }
 0x11b   :  { %v285_v8 = vmul.f32 %v802_v40, %v276_v6  ;;  %v315_v9 = vsel %vm84_vm0, %v311_v62, %v312_v5 }
 0x11c   :  { %v319_v11 = vmul.f32 %v315_v9, %v974_v48  ;;  %v307_v48 = vmul.f32 %v304_v19, %v976_v49 }
 0x11d   :  { %v293_v12 = vadd.f32 %v803_v43, %v285_v8 }
 0x11e   :  { %v324_v14 = vpack.c.bf16 %v319_v11, %v318_v10 }
 0x11f   :  { %v297_v15 = vmax.f32 %v293_v12, 0.0 }
 0x120   :  { %566 = vmatmul.bf16.vlgmr.msrb.gmra.mxu1 %v324_v14 }
 0x121   :  { %v326_v17 = vpack.c.bf16 %v297_v15, %v296_v2  ;;  %v301_v18 = vrot.slane %v297_v15, 7  ;;  %v313_v21 = vrot.slane %v297_v15, 1 }
 0x123   :  { %552 = vmatmul.bf16.gmra.mxu3 %v326_v17  ;;  %v305_v20 = vsel %vm51_vm1, %v301_v18, %v298_v16  ;;  %v314_v24 = vsel %vm84_vm0, %v312_v5, %v313_v21  ;;  %v317_v25 = vsel %vm84_vm0, %v313_v21, %v310_v1  ;;  %v302_v30 = vsel %vm51_vm1, %v300_v28, %v301_v18 }
 0x124   :  { %v306_v37 = vmul.f32 %v305_v20, %v959_v38  ;;  %v320_v26 = vmul.f32 %v314_v24, %v990_v61  ;;  %v321_v27 = vmul.f32 %v317_v25, %v994_v63  ;;  %v303_v38 = vsel %vm51_vm1, %v299_v13, %v300_v28  ;;  %v804_v63 = vld [vmem:[%s1127_s7] ss:$0 sm:$0xff] }
 0x125   :  { %v309_v49 = vmul.f32 %v302_v30, %v987_v59  ;;  %v308_v31 = vmul.f32 %v303_v38, %v981_v53 }
 0x126   :  { %v322_v23 = vpack.c.bf16 %v307_v48, %v306_v37  ;;  %v327_v29 = vpack.c.bf16 %v321_v27, %v320_v26 }
 0x127   :  { %v325_v32 = vpack.c.bf16 %v309_v49, %v308_v31 }
 0x128   :  { %528 = vmatmul.bf16.vlgmr.msra.gmra.mxu2 %v322_v23 }
 0x130   :  { %571 = vmatmul.bf16.gmra.mxu1 %v327_v29 }
 0x138   :  { %533 = vmatmul.bf16.gmra.mxu2 %v325_v32 }
 0x196   :  { %v548_v33 = vpop.f32.mrf.mxu3 }
 0x19d   :  { %v567_v34 = vpop.f32.mrf.mxu1 }
 0x19e   :  { %v550_v39 = vpop.f32.mrf.mxu3 }
 0x1a5   :  { %v569_v59 = vpop.f32.mrf.mxu1 }
 0x1a6   :  { %v553_v46 = vpop.f32.mrf.mxu3 }
 0x1ab   :  { %v529_v61 = vpop.f32.mrf.mxu2 }
 0x1ac   :  { %v549_v35 = vadd.f32 %v548_v33, %v529_v61 }
 0x1ad   :  { %v572_v50 = vpop.f32.mrf.mxu1 }
 0x1ae   :  { %v568_v36 = vadd.f32 %v567_v34, %v549_v35  ;;  %v555_v58 = vpop.f32.mrf.mxu3 }
 0x1b0   :  { %v581_v40 = vmul.f32 %v804_v63, %v568_v36 }
 0x1b2   :  { %v589_v41 = vadd.f32 %v805_v22, %v581_v40 }
 0x1b3   :  { %v531_v53 = vpop.f32.mrf.mxu2 }
 0x1b4   :  { %v593_v42 = vmax.f32 %v589_v41, 0.0  ;;  %v551_v43 = vadd.f32 %v550_v39, %v531_v53 }
 0x1b5   :  { %v574_v1 = vpop.f32.mrf.mxu1 }
 0x1b6   :  { %597 = vst [vmem:[%s1129_s9] sm:$0xff] %v593_v42  ;;  %v570_v44 = vadd.f32 %v569_v59, %v551_v43 }
 0x1b8   :  { %v582_v45 = vmul.f32 %v804_v63, %v570_v44 }
 0x1ba   :  { %v590_v47 = vadd.f32 %v805_v22, %v582_v45 }
 0x1bb   :  { %v534_v51 = vpop.f32.mrf.mxu2 }
 0x1bc   :  { %v594_v52 = vmax.f32 %v590_v47, 0.0  ;;  %v554_v54 = vadd.f32 %v553_v46, %v534_v51 }
 0x1be   :  { %598 = vst [vmem:[%s1129_s9 + $0x8] sm:$0xff] %v594_v52  ;;  %v573_v55 = vadd.f32 %v572_v50, %v554_v54 }
 0x1c0   :  { %v583_v56 = vmul.f32 %v804_v63, %v573_v55 }
 0x1c2   :  { %v591_v57 = vadd.f32 %v805_v22, %v583_v56 }
 0x1c3   :  { %v536_v60 = vpop.f32.mrf.mxu2 }
 0x1c4   :  { %v595_v62 = vmax.f32 %v591_v57, 0.0  ;;  %v556_v0 = vadd.f32 %v555_v58, %v536_v60 }
 0x1c6   :  { %599 = vst [vmem:[%s1129_s9 + $0x10] sm:$0xff] %v595_v62  ;;  %v575_v2 = vadd.f32 %v574_v1, %v556_v0 }
 0x1c8   :  { %v584_v3 = vmul.f32 %v804_v63, %v575_v2 }
 0x1ca   :  { %v592_v4 = vadd.f32 %v805_v22, %v584_v3 }
 0x1cc   :  { %v596_v5 = vmax.f32 %v592_v4, 0.0 }
 0x1ce   :  { %600 = vst [vmem:[%s1129_s9 + $0x18] sm:$0xff] %v596_v5 }

</bundles_post_ra>
